<compile_context>
chip_gen: v5e
topology: v5e:2x2
jax: 0.10.0
libtpu: 0.0.40
codegen_flags: <defaults>
</compile_context>

<pallas_src>
import jax
import jax.numpy as jnp
from jax.experimental import pallas as pl
from jax.experimental.pallas import tpu as pltpu


def highway_kernel(x_ref, wcat_ref, bcat_ref, o_ref):
    """One row-tile of the Highway forward pass.

    x_ref:    (TM, E)    input rows (native dtype)
    wcat_ref: (E, 2E)    [W_proj | W_gate], (in, out) layout
    bcat_ref: (1, 2E)    [b_proj | b_gate], float32
    o_ref:    (TM, E)    output rows
    """
    E = x_ref.shape[1]

    x_in = x_ref[...]
    # Single fused matmul on the MXU; f32 accumulation.
    y = jnp.dot(x_in, wcat_ref[...], preferred_element_type=jnp.float32)
    y = y + bcat_ref[...]

    proj = jnp.maximum(y[:, :E], 0.0)          # ReLU(proj)
    gate = jax.nn.sigmoid(y[:, E:])            # sigmoid(gate) -> EUP

    x_f32 = x_in.astype(jnp.float32)
    out = x_f32 + gate * (proj - x_f32)        # gate*proj + (1-gate)*x
    o_ref[...] = out.astype(o_ref.dtype)


@jax.jit
def highway_forward(x, w_proj, b_proj, w_gate, b_gate):
    """x: (S, B, E) -> (S, B, E); identical semantics to the PyTorch Highway.

    Weights are (in_features, out_features), i.e. transposed vs. PyTorch's
    Linear.weight, so the kernel computes x @ W + b.
    """
    S, B, E = x.shape
    M = S * B
    x2d = x.reshape(M, E)

    # Fuse proj/gate parameters into one (E, 2E) weight and (1, 2E) bias.
    w_cat = jnp.concatenate([w_proj, w_gate], axis=1)                    # (E, 2E)
    b_cat = jnp.concatenate([b_proj, b_gate]).reshape(1, 2 * E)
    b_cat = b_cat.astype(jnp.float32)

    # Choose a large row tile (up to 512) and pad rows so the grid is exact.
    m_pad8 = ((M + 7) // 8) * 8
    tile_m = min(512, m_pad8)
    m_pad = ((m_pad8 + tile_m - 1) // tile_m) * tile_m
    if m_pad != M:
        x2d = jnp.pad(x2d, ((0, m_pad - M), (0, 0)))

    grid_m = m_pad // tile_m

    out2d = pl.pallas_call(
        highway_kernel,
        out_shape=jax.ShapeDtypeStruct((m_pad, E), x.dtype),
        grid_spec=pltpu.PrefetchScalarGridSpec(
            num_scalar_prefetch=0,
            grid=(grid_m,),
            in_specs=[
                pl.BlockSpec((tile_m, E), lambda i: (i, 0)),     # x rows (streamed)
                pl.BlockSpec((E, 2 * E), lambda i: (0, 0)),      # fused weights (resident)
                pl.BlockSpec((1, 2 * E), lambda i: (0, 0)),      # fused bias (resident)
            ],
            out_specs=pl.BlockSpec((tile_m, E), lambda i: (i, 0)),
        ),
        compiler_params=pltpu.CompilerParams(
            dimension_semantics=("parallel",),
        ),
    )(x2d, w_cat, b_cat)

    if m_pad != M:
        out2d = out2d[:M]
    return out2d.reshape(S, B, E)


def highway_reference(x, w_proj, b_proj, w_gate, b_gate):
    """Pure-JAX reference (mirrors the PyTorch forward)."""
    x_proj = jax.nn.relu(jnp.einsum("sbe,ef->sbf", x, w_proj) + b_proj)
    x_gate = jax.nn.sigmoid(jnp.einsum("sbe,ef->sbf", x, w_gate) + b_gate)
    return x_gate * x_proj + (1.0 - x_gate) * x


if __name__ == "__main__":
    # Small shapes consistent with the module: S=8, B=2, E=128.
    S, B, E = 8, 2, 128
    gate_bias = -2.0

    key = jax.random.PRNGKey(0)
    kx, kwp, kbp, kwg = jax.random.split(key, 4)

    x = jax.random.normal(kx, (S, B, E), dtype=jnp.float32)

    # Linear-like init; weights stored as (in_features, out_features).
    bound = 1.0 / jnp.sqrt(E)
    w_proj = jax.random.uniform(kwp, (E, E), jnp.float32, -bound, bound)
    b_proj = jax.random.uniform(kbp, (E,), jnp.float32, -bound, bound)
    w_gate = jax.random.uniform(kwg, (E, E), jnp.float32, -bound, bound)
    b_gate = jnp.full((E,), gate_bias, dtype=jnp.float32)  # .fill_(gate_bias)

    out = highway_forward(x, w_proj, b_proj, w_gate, b_gate)
    out = jax.block_until_ready(out)

    ref = highway_reference(x, w_proj, b_proj, w_gate, b_gate)
    assert out.shape == (S, B, E)
    assert jnp.allclose(out, ref, atol=1e-5, rtol=1e-5), "mismatch vs reference"

    print("KERNEL_OK")
</pallas_src>

<mosaic_0001>
module attributes {stable_mosaic.version = 11 : i64} {
  func.func @highway_kernel(%arg0: i32, %arg1: memref<16x128xf32, #tpu.memory_space<vmem>>, %arg2: memref<128x256xf32, #tpu.memory_space<vmem>>, %arg3: memref<1x256xf32, #tpu.memory_space<vmem>>, %arg4: memref<16x128xf32, #tpu.memory_space<vmem>>) attributes {dimension_semantics = [#tpu.dimension_semantics<parallel>], iteration_bounds = array<i64: 1>, scalar_prefetch = 0 : i64, scratch_operands = 0 : i64, tpu.core_type = #tpu.core_type<tc>, window_params = [{transform_indices = @transform_0, window_bounds = array<i64: 16, 128>}, {pipeline_mode = #tpu.pipeline_mode<synchronous>, transform_indices = @transform_1, window_bounds = array<i64: 128, 256>}, {pipeline_mode = #tpu.pipeline_mode<synchronous>, transform_indices = @transform_2, window_bounds = array<i64: 1, 256>}, {transform_indices = @transform_3, window_bounds = array<i64: 16, 128>}]} {
    %c0 = arith.constant 0 : index
    %c0_0 = arith.constant 0 : index
    %0 = vector.load %arg1[%c0, %c0_0] : memref<16x128xf32, #tpu.memory_space<vmem>>, vector<16x128xf32>
    %c0_1 = arith.constant 0 : index
    %c0_2 = arith.constant 0 : index
    %1 = vector.load %arg2[%c0_1, %c0_2] : memref<128x256xf32, #tpu.memory_space<vmem>>, vector<128x256xf32>
    %cst = arith.constant dense<0.000000e+00> : vector<16x256xf32>
    %2 = tpu.matmul %0, %1, %cst {dimension_numbers = #tpu.dot_dimension_numbers<[1], [0], [0], [1], [0, 0, 1, 1], [], []>} : vector<16x128xf32>, vector<128x256xf32>, vector<16x256xf32> -> vector<16x256xf32>
    %c0_3 = arith.constant 0 : index
    %c0_4 = arith.constant 0 : index
    %3 = vector.load %arg3[%c0_3, %c0_4] : memref<1x256xf32, #tpu.memory_space<vmem>>, vector<1x256xf32>
    %4 = vector.broadcast %3 : vector<1x256xf32> to vector<16x256xf32>
    %5 = arith.addf %2, %4 : vector<16x256xf32>
    %6 = vector.extract_strided_slice %5 {offsets = [0, 0], sizes = [16, 128], strides = [1, 1]} : vector<16x256xf32> to vector<16x128xf32>
    %cst_5 = arith.constant 0.000000e+00 : f32
    %7 = vector.broadcast %cst_5 : f32 to vector<16x128xf32>
    %8 = arith.maximumf %6, %7 : vector<16x128xf32>
    %9 = vector.extract_strided_slice %5 {offsets = [0, 128], sizes = [16, 128], strides = [1, 1]} : vector<16x256xf32> to vector<16x128xf32>
    %10 = arith.negf %9 : vector<16x128xf32>
    %11 = math.exp %10 : vector<16x128xf32>
    %cst_6 = arith.constant 1.000000e+00 : f32
    %12 = vector.broadcast %cst_6 : f32 to vector<16x128xf32>
    %13 = arith.addf %12, %11 : vector<16x128xf32>
    %14 = arith.divf %12, %13 : vector<16x128xf32>
    %15 = arith.subf %8, %0 : vector<16x128xf32>
    %16 = arith.mulf %14, %15 : vector<16x128xf32>
    %17 = arith.addf %0, %16 : vector<16x128xf32>
    %c0_7 = arith.constant 0 : index
    %c0_8 = arith.constant 0 : index
    %18 = vector.load %arg4[%c0_7, %c0_8] : memref<16x128xf32, #tpu.memory_space<vmem>>, vector<16x128xf32>
    tpu.vector_store %arg4[%c0_7, %c0_8], %17 {strides = array<i32>} : memref<16x128xf32, #tpu.memory_space<vmem>>, vector<16x128xf32>,
    return
  }
  func.func @transform_0(%arg0: i32) -> (i32, i32) {
    %c0_i32 = arith.constant 0 : i32
    %c0_i32_0 = arith.constant 0 : i32
    return %arg0, %c0_i32 : i32, i32
  }
  func.func @transform_1(%arg0: i32) -> (i32, i32) {
    %c0_i32 = arith.constant 0 : i32
    %c0_i32_0 = arith.constant 0 : i32
    %c0_i32_1 = arith.constant 0 : i32
    return %c0_i32, %c0_i32_0 : i32, i32
  }
  func.func @transform_2(%arg0: i32) -> (i32, i32) {
    %c0_i32 = arith.constant 0 : i32
    %c0_i32_0 = arith.constant 0 : i32
    %c0_i32_1 = arith.constant 0 : i32
    return %c0_i32, %c0_i32_0 : i32, i32
  }
  func.func @transform_3(%arg0: i32) -> (i32, i32) {
    %c0_i32 = arith.constant 0 : i32
    %c0_i32_0 = arith.constant 0 : i32
    return %arg0, %c0_i32 : i32, i32
  }
}

</mosaic_0001>

<bundles_post_ra>
// kernel: highway_forward.1
= control target key start
LH: loop header
LB: loop body
LE: loop exit
PB: predicated region body
PF: predicated region fallthrough
CT: control target
= control target key end

     0   :  { %s381_s0 = inlined_call_operand.vmem [shape: f32[16,128], index: 0, kind: input, shape index: {}]   ;;  %s382_s1 = inlined_call_operand.vmem [shape: f32[128,256], index: 1, kind: input, shape index: {}]   ;;  %s383_s2 = inlined_call_operand.vmem [shape: f32[1,256], index: 2, kind: input, shape index: {}]   ;;  %s384_s3 = inlined_call_operand.hbm [shape: f32[16,128], index: 3, kind: output, shape index: {}]  }
   0x1   :  { %v48_v0 = vld [vmem:[%s382_s1 + $0xf8] sm:$0xff]  ;;  %v46_v1 = vld [vmem:[%s382_s1 + $0xe8] sm:$0xff]  ;;  %v47_v4 = vld [vmem:[%s382_s1 + $0xf0] sm:$0xff] }
   0x2   :  { %78 = vmatpush.msra.mxu1 %v48_v0  ;;  %185 = vmatpush.msra.mxu3 %v48_v0  ;;  %v44_v2 = vld [vmem:[%s382_s1 + $0xd8] sm:$0xff]  ;;  %v42_v3 = vld [vmem:[%s382_s1 + $0xc8] sm:$0xff]  ;;  %v45_v5 = vld [vmem:[%s382_s1 + $0xe0] sm:$0xff] }
   0x3   :  { %v40_v6 = vld [vmem:[%s382_s1 + $0xb8] sm:$0xff]  ;;  %55 = vmatpush.msra.mxu0 %v47_v4  ;;  %169 = vmatpush.msra.mxu2 %v47_v4  ;;  %v43_v7 = vld [vmem:[%s382_s1 + $0xd0] sm:$0xff]  ;;  %v38_v8 = vld [vmem:[%s382_s1 + $0xa8] sm:$0xff] }
   0x4   :  { %79 = vmatpush.msra.mxu1 %v46_v1  ;;  %186 = vmatpush.msra.mxu3 %v46_v1  ;;  %v41_v9 = vld [vmem:[%s382_s1 + $0xc0] sm:$0xff]  ;;  %v36_v10 = vld [vmem:[%s382_s1 + $0x98] sm:$0xff]  ;;  %v39_v11 = vld [vmem:[%s382_s1 + $0xb0] sm:$0xff] }
   0x5   :  { %56 = vmatpush.msra.mxu0 %v45_v5  ;;  %170 = vmatpush.msra.mxu2 %v45_v5 }
   0x6   :  { %80 = vmatpush.msra.mxu1 %v44_v2  ;;  %187 = vmatpush.msra.mxu3 %v44_v2 }
   0x7   :  { %57 = vmatpush.msra.mxu0 %v43_v7  ;;  %171 = vmatpush.msra.mxu2 %v43_v7 }
   0x8   :  { %81 = vmatpush.msra.mxu1 %v42_v3  ;;  %188 = vmatpush.msra.mxu3 %v42_v3 }
   0xa   :  { %82 = vmatpush.msra.mxu1 %v40_v6  ;;  %189 = vmatpush.msra.mxu3 %v40_v6 }
   0xc   :  { %83 = vmatpush.msra.mxu1 %v38_v8  ;;  %190 = vmatpush.msra.mxu3 %v38_v8 }
   0xd   :  { %8 = vsyncpa [#allocation3], 0  ;;  %v34_v12 = vld [vmem:[%s382_s1 + $0x88] sm:$0xff]  ;;  %58 = vmatpush.msra.mxu0 %v41_v9  ;;  %172 = vmatpush.msra.mxu2 %v41_v9  ;;  %v37_v13 = vld [vmem:[%s382_s1 + $0xa0] sm:$0xff]  ;;  %s155_s29 = sshll.u32 %s384_s3, 4  ;;  %s239_s30 = smov 128   ;;  %s156_s29 = int_to_ptr.hbm [resolvable:$true] %s155_s29 }
   0xe   :  { %84 = vmatpush.msra.mxu1 %v36_v10  ;;  %191 = vmatpush.msra.mxu3 %v36_v10  ;;  %v32_v14 = vld [vmem:[%s382_s1 + $0x78] sm:$0xff]  ;;  %v35_v15 = vld [vmem:[%s382_s1 + $0x90] sm:$0xff]  ;;  %v30_v16 = vld [vmem:[%s382_s1 + $0x68] sm:$0xff]  ;;  %s240_s4 = smov 8  }
   0xf   :  { %59 = vmatpush.msra.mxu0 %v39_v11  ;;  %173 = vmatpush.msra.mxu2 %v39_v11  ;;  %v33_v17 = vld [vmem:[%s382_s1 + $0x80] sm:$0xff]  ;;  %v28_v18 = vld [vmem:[%s382_s1 + $0x58] sm:$0xff]  ;;  %v31_v19 = vld [vmem:[%s382_s1 + $0x70] sm:$0xff] }
  0x10   :  { %85 = vmatpush.msra.mxu1 %v34_v12  ;;  %192 = vmatpush.msra.mxu3 %v34_v12  ;;  %v26_v20 = vld [vmem:[%s382_s1 + $0x48] sm:$0xff]  ;;  %v29_v21 = vld [vmem:[%s382_s1 + $0x60] sm:$0xff]  ;;  %v24_v22 = vld [vmem:[%s382_s1 + $0x38] sm:$0xff] }
  0x11   :  { %60 = vmatpush.msra.mxu0 %v37_v13  ;;  %174 = vmatpush.msra.mxu2 %v37_v13  ;;  %v27_v23 = vld [vmem:[%s382_s1 + $0x50] sm:$0xff]  ;;  %v22_v24 = vld [vmem:[%s382_s1 + $0x28] sm:$0xff]  ;;  %v25_v25 = vld [vmem:[%s382_s1 + $0x40] sm:$0xff] }
  0x12   :  { %86 = vmatpush.msra.mxu1 %v32_v14  ;;  %193 = vmatpush.msra.mxu3 %v32_v14  ;;  %v20_v26 = vld [vmem:[%s382_s1 + $0x18] sm:$0xff]  ;;  %v23_v27 = vld [vmem:[%s382_s1 + $0x30] sm:$0xff]  ;;  %v18_v28 = vld [vmem:[%s382_s1 + $0x8] sm:$0xff] }
  0x13   :  { %61 = vmatpush.msra.mxu0 %v35_v15  ;;  %175 = vmatpush.msra.mxu2 %v35_v15  ;;  %v351_v29 = vld [vmem:[%s381_s0] sm:$0xff]  ;;  %v356_v30 = vld [vmem:[%s381_s0 + $0x8] sm:$0xff]  ;;  %v19_v32 = vld [vmem:[%s382_s1 + $0x10] sm:$0xff] }
  0x14   :  { %87 = vmatpush.msra.mxu1 %v30_v16  ;;  %194 = vmatpush.msra.mxu3 %v30_v16  ;;  %v21_v31 = vld [vmem:[%s382_s1 + $0x20] sm:$0xff] }
  0x15   :  { %62 = vmatpush.msra.mxu0 %v33_v17  ;;  %176 = vmatpush.msra.mxu2 %v33_v17  ;;  %v17_v33 = vld [vmem:[%s382_s1] sm:$0xff]  ;;  %s238_s1 = smov [#allocation2]  }
  0x16   :  { %88 = vmatpush.msra.mxu1 %v28_v18  ;;  %195 = vmatpush.msra.mxu3 %v28_v18  ;;  %v49_v34 = vld [vmem:[%s383_s2] sm:$0x3]  ;;  %s153_s2 = sshll.u32 %s238_s1, 4  ;;  %s154_s2 = int_to_ptr.vmem [resolvable:$true] %s153_s2 }
  0x17   :  { %63 = vmatpush.msra.mxu0 %v31_v19  ;;  %177 = vmatpush.msra.mxu2 %v31_v19  ;;  %v52_v35 = vperm.slane %v49_v34, 1  ;;  %v51_v44 = vperm.slane %v49_v34, 0 }
  0x18   :  { %89 = vmatpush.msra.mxu1 %v26_v20  ;;  %196 = vmatpush.msra.mxu3 %v26_v20 }
  0x19   :  { %64 = vmatpush.msra.mxu0 %v29_v21  ;;  %178 = vmatpush.msra.mxu2 %v29_v21 }
  0x1a   :  { %90 = vmatpush.msra.mxu1 %v24_v22  ;;  %197 = vmatpush.msra.mxu3 %v24_v22 }
  0x1b   :  { %65 = vmatpush.msra.mxu0 %v27_v23  ;;  %179 = vmatpush.msra.mxu2 %v27_v23 }
  0x1c   :  { %91 = vmatpush.msra.mxu1 %v22_v24  ;;  %198 = vmatpush.msra.mxu3 %v22_v24 }
  0x1d   :  { %66 = vmatpush.msra.mxu0 %v25_v25  ;;  %180 = vmatpush.msra.mxu2 %v25_v25 }
  0x1e   :  { %92 = vmatpush.msra.mxu1 %v20_v26  ;;  %199 = vmatpush.msra.mxu3 %v20_v26 }
  0x1f   :  { %67 = vmatpush.msra.mxu0 %v23_v27  ;;  %181 = vmatpush.msra.mxu2 %v23_v27 }
  0x20   :  { %93 = vmatpush.msra.mxu1 %v18_v28  ;;  %200 = vmatpush.msra.mxu3 %v18_v28 }
  0x21   :  { %94 = vmatmul.f32.vlgmr.msra.gmra.mxu1 %v351_v29  ;;  %97 = vmatmul.f32.vlgmr.msra.gmra.mxu3 %v356_v30 }
  0x22   :  { %68 = vmatpush.msra.mxu0 %v21_v31  ;;  %182 = vmatpush.msra.mxu2 %v21_v31 }
  0x24   :  { %69 = vmatpush.msra.mxu0 %v19_v32  ;;  %183 = vmatpush.msra.mxu2 %v19_v32 }
  0x26   :  { %70 = vmatpush.msra.mxu0 %v17_v33  ;;  %184 = vmatpush.msra.mxu2 %v17_v33 }
  0x27   :  { %71 = vmatmul.f32.vlgmr.msra.gmra.mxu0 %v351_v29  ;;  %74 = vmatmul.f32.vlgmr.msra.gmra.mxu2 %v356_v30 }
  0x9e   :  { %v95_v36 = vpop.f32.mrf.mxu1 }
  0x9f   :  { %v96_v37 = vadd.f32 %v95_v36, %v52_v35 }
  0xa1   :  { %v167_v38 = vmul.f32 -1.442695, %v96_v37 }
  0xa3   :  { %204 = vpow2.f32 %v167_v38 }
  0xa4   :  { %v98_v39 = vpop.f32.mrf.mxu3  ;;  %v72_v45 = vpop.f32.mrf.mxu0 }
  0xa5   :  { %v99_v40 = vadd.f32 %v98_v39, %v52_v35  ;;  %v73_v48 = vadd.f32 %v72_v45, %v51_v44 }
  0xa7   :  { %v168_v41 = vmul.f32 -1.442695, %v99_v40  ;;  %v101_v53 = vmax.f32 %v73_v48, 0.0 }
  0xa9   :  { %v205_v42 = vpop.eup %204  ;;  %206 = vpow2.f32 %v168_v41  ;;  %v141_v61 = vsub.f32 %v101_v53, %v351_v29 }
  0xaa   :  { %v109_v43 = vadd.f32 1.0, %v205_v42  ;;  %v75_v51 = vpop.f32.mrf.mxu2 }
  0xab   :  { %v76_v55 = vadd.f32 %v75_v51, %v51_v44 }
  0xac   :  { %208 = vrcp.f32 %v109_v43  ;;  %v122_v54 = vand.u32 2147483648, %v109_v43  ;;  %vm116_vm0 = vweird.f32 %v109_v43  ;;  %v120_v57 = vand.u32 2147483647, %v109_v43 }
  0xad   :  { %v102_v1 = vmax.f32 %v76_v55, 0.0 }
  0xae   :  { %v123_v62 = vor.u32 1.1754944e-38, %v122_v54  ;;  %vm121_vm3 = vcmp.eq.f32.partialorder %v120_v57, 8.507059e+37 }
  0xaf   :  { %v207_v46 = vpop.eup %206  ;;  %v142_v9 = vsub.f32 %v102_v1, %v356_v30 }
  0xb0   :  { %v110_v47 = vadd.f32 1.0, %v207_v46 }
  0xb2   :  { %v209_v49 = vpop.eup %208  ;;  %210 = vrcp.f32 %v110_v47  ;;  %v137_v3 = vand.u32 2147483648, %v110_v47  ;;  %v135_v6 = vand.u32 2147483647, %v110_v47  ;;  %vm131_vm5 = vweird.f32 %v110_v47 }
  0xb3   :  { %v112_v50 = vmul.f32 %v209_v49, %v109_v43  ;;  %vm117_vm1 = vweird.f32 %v209_v49 }
  0xb4   :  { %vm118_vm2 = vmor %vm116_vm0, %vm117_vm1  ;;  %v138_v10 = vor.u32 1.1754944e-38, %v137_v3  ;;  %vm136_vm7 = vcmp.eq.f32.partialorder %v135_v6, 8.507059e+37 }
  0xb5   :  { %v113_v52 = vsub.f32 1.0, %v112_v50 }
  0xb7   :  { %v114_v56 = vmul.f32 %v209_v49, %v113_v52 }
  0xb8   :  { %v211_v58 = vpop.eup %210 }
  0xb9   :  { %v127_v59 = vmul.f32 %v211_v58, %v110_v47  ;;  %v115_v60 = vadd.f32 %v209_v49, %v114_v56  ;;  %vm132_vm4 = vweird.f32 %v211_v58 }
  0xba   :  { %vm133_vm6 = vmor %vm131_vm5, %vm132_vm4 }
  0xbb   :  { %v128_v63 = vsub.f32 1.0, %v127_v59  ;;  %v119_v0 = vsel %vm118_vm2, %v209_v49, %v115_v60 }
  0xbc   :  { %v124_v2 = vsel %vm121_vm3, %v123_v62, %v119_v0 }
  0xbd   :  { %v143_v4 = vmul.f32 %v141_v61, %v124_v2  ;;  %v129_v5 = vmul.f32 %v211_v58, %v128_v63 }
  0xbf   :  { %v145_v7 = vadd.f32 %v143_v4, %v351_v29  ;;  %v130_v8 = vadd.f32 %v211_v58, %v129_v5 }
  0xc1   :  { %147 = vst [vmem:[#allocation2] sm:$0xff] %v145_v7  ;;  %v134_v11 = vsel %vm133_vm6, %v211_v58, %v130_v8 }
  0xc2   :  { %v139_v12 = vsel %vm136_vm7, %v138_v10, %v134_v11 }
  0xc3   :  { %v144_v13 = vmul.f32 %v142_v9, %v139_v12 }
  0xc5   :  { %v146_v14 = vadd.f32 %v144_v13, %v356_v30 }
  0xc7   :  { %148 = vst [vmem:[#allocation2 + $0x8] sm:$0xff] %v146_v14 }
  0xc8   :  { %161 = dma.vmem_to_hbm [thread:$0]  %s154_s2, 256, %s156_s29, [#allocation3], %s239_s30, %s239_s30, %s240_s4  }
  0xc9   :  { %236 = dma.done.wait [#allocation3], 256  }
  0xca   :  { %237 = vsyncadd [#allocation3], 4294967040 }
  0xcb   :  { %166 = vsyncpa [#allocation3], 1 }

</bundles_post_ra>
